<compile_context>
chip_gen: v6e
topology: v6e:2x2x1
jax: 0.10.0
libtpu: 0.0.40
codegen_flags: <defaults>
</compile_context>

<pallas_src>
import jax
import jax.numpy as jnp
import numpy as np
from jax.experimental import pallas as pl
from jax.experimental.pallas import tpu as pltpu

# AWQ packing order: nibble i of each int32 holds column (8*c + AWQ_ORDER[i]).
AWQ_ORDER = [0, 2, 4, 6, 1, 3, 5, 7]
# inverse permutation: column offset j lives in nibble REVERSE_AWQ_ORDER[j]
REVERSE_AWQ_ORDER = [0, 4, 1, 5, 2, 6, 3, 7]


# ---------------------------------------------------------------------------
# AWQ packing / unpacking glue (plain JAX, one-time weight prep only)
# ---------------------------------------------------------------------------
def pack_awq(int_vals):
    """Pack (rows, N) int values in [0, 16) into AWQ int32 (rows, N//8)."""
    rows, n = int_vals.shape
    packed = jnp.zeros((rows, n // 8), dtype=jnp.int32)
    for i in range(8):
        packed = packed | (int_vals[:, AWQ_ORDER[i]::8].astype(jnp.int32) << (4 * i))
    return packed


def unpack_awq(packed, n):
    """Unpack AWQ int32 (rows, N//8) back to (rows, N) int32 values in [0, 16)."""
    rows = packed.shape[0]
    nibs = [(packed >> (4 * REVERSE_AWQ_ORDER[j])) & 0xF for j in range(8)]
    return jnp.stack(nibs, axis=-1).reshape(rows, n)


def prepare_awq_weights(qweight, qzeros, scales, group_size):
    """One-time weight prep (analogue of IPEX post_init / from_weight).

    Returns:
      packed_k : (G, group_size//8, N) int32 -- 4-bit codes re-packed along K so
                 that nibble i of packed row r holds original row i*(gs//8)+r of
                 the group; the in-kernel shift/mask restores rows in original K
                 order (so x needs no permutation).
      s3       : (G, 1, N) f32 scales
      zs3      : (G, 1, N) f32 with zs = -z*s   (fused dequant:  w*s + zs)
    """
    k = qweight.shape[0]
    n = scales.shape[1]
    assert group_size % 8 == 0 and k % group_size == 0
    g = k // group_size
    sub = group_size // 8

    w_int = unpack_awq(qweight, n)                       # (K, N) int in [0,16)
    z_int = unpack_awq(qzeros, n)                        # (G, N)

    w4 = w_int.reshape(g, 8, sub, n)                     # [grp, i, r, col]
    packed_k = jnp.zeros((g, sub, n), dtype=jnp.int32)
    for i in range(8):
        packed_k = packed_k | (w4[:, i, :, :].astype(jnp.int32) << (4 * i))

    s_f32 = scales.astype(jnp.float32)                   # (G, N)
    zs_f32 = -z_int.astype(jnp.float32) * s_f32          # (G, N)
    return packed_k, s_f32.reshape(g, 1, n), zs_f32.reshape(g, 1, n)


# ---------------------------------------------------------------------------
# Pallas kernel factory.
#   grid = (M tiles, N tiles, K group-steps); last axis is the reduction axis.
#   factored=False  (prefill): dequant slabs into a shared (tk, tn) bf16 scratch,
#                              ONE dot + ONE acc update per grid step.
#   factored=True   (decode) : raw bf16 codes into the scratch, per-group dot,
#                              scale/zero applied post-matmul:
#                              acc += (x_g @ codes)*s + rowsum(x_g)*(-z*s).
# ---------------------------------------------------------------------------
def _make_awq_kernel(factored):
    def kernel(x_ref, wp_ref, s_ref, zs_ref, b_ref, o_ref, acc_ref, w_ref):
        gstep = pl.program_id(2)

        @pl.when(gstep == 0)
        def _zero():
            acc_ref[...] = jnp.zeros_like(acc_ref)

        gps, sub, _ = wp_ref.shape          # groups folded per step, gs//8, tn
        gs = sub * 8

        for gi in range(gps):                              # static, unrolled
            packed = wp_ref[gi]                            # (gs//8, tn) int32
            # nibble i holds original rows [i*sub, (i+1)*sub) of this group;
            # write each slab straight into its destination rows of the scratch
            # (no sublane concatenate, no extra VMEM materialization).
            for i in range(8):
                codes = ((packed >> (4 * i)) & 0xF).astype(jnp.float32)
                row0 = gi * gs + i * sub
                if factored:
                    w_ref[pl.ds(row0, sub), :] = codes.astype(jnp.bfloat16)
                else:
                    w_ref[pl.ds(row0, sub), :] = (
                        codes * s_ref[gi] + zs_ref[gi]).astype(jnp.bfloat16)

            if factored:
                x_g = x_ref[:, pl.ds(gi * gs, gs)]                     # (tm, gs)
                p = jnp.dot(x_g, w_ref[pl.ds(gi * gs, gs), :],
                            preferred_element_type=jnp.float32)        # (tm, tn)
                xs = jnp.sum(x_g.astype(jnp.float32), axis=-1, keepdims=True)
                acc_ref[...] += p * s_ref[gi] + xs * zs_ref[gi]

        if not factored:
            # Single MXU dot over the whole folded-K tile; single acc update.
            acc_ref[...] += jnp.dot(x_ref[...], w_ref[...],
                                    preferred_element_type=jnp.float32)

        @pl.when(gstep == pl.num_programs(2) - 1)
        def _store():
            o_ref[...] = (acc_ref[...] + b_ref[...].astype(jnp.float32)
                          ).astype(o_ref.dtype)

    return kernel


def _pick_tile(dim, candidates):
    for c in candidates:
        if dim >= c and dim % c == 0:
            return c
    return dim


def awq_linear_packed(x, packed_k, s3, zs3, bias, group_size,
                      *, tm=None, tn=None, groups_per_step=None, mode=None):
    """x: (M, K) bf16.  Returns (M, N) bf16 = x @ dequant(W) + bias."""
    m, k = x.shape
    n_groups, sub, n = packed_k.shape
    assert sub * 8 == group_size and n_groups * group_size == k

    # ---- tile selection ------------------------------------------------------
    # Prefer growing tn first (x is 2 B/elem, packed W is 0.5 B/elem); cap 512.
    if tn is None:
        tn = _pick_tile(n, (512, 256, 128))
    if tm is None:
        tm = _pick_tile(m, (512, 256, 128, 64, 32, 16, 8))
    assert m % tm == 0 and n % tn == 0

    # Decode-ish (small tm) -> factored scale/zero; prefill -> shared dequant
    # scratch with one dot per step.
    if mode is None:
        mode = "decode" if tm <= 128 else "prefill"
    factored = (mode == "decode")

    # Reduction fold: up to tk=1024; fold the whole K for decode when K is small.
    if groups_per_step is None:
        tk_cap = k if (factored and k <= 4096) else 1024
        valid = [gg for gg in range(1, n_groups + 1)
                 if n_groups % gg == 0
                 and ((gg * group_size) % 128 == 0 or gg == n_groups)]
        fitting = [gg for gg in valid if gg * group_size <= tk_cap]
        groups_per_step = max(fitting) if fitting else min(valid)
    gps = groups_per_step
    assert n_groups % gps == 0
    tk = gps * group_size

    if bias is None:
        bias = jnp.zeros((n,), dtype=x.dtype)
    bias2d = bias.reshape(1, n)

    grid = (m // tm, n // tn, n_groups // gps)
    # NOTE (v7x megacore): with the chosen caps, N/tn >= 2 for typical layer
    # widths, so at least one "parallel" axis has >= 2 blocks and both TCs work.

    cost = pl.CostEstimate(
        flops=2 * m * n * k,
        transcendentals=0,
        bytes_accessed=int(m * k * 2 + k * n // 2 + n_groups * n * 8 + m * n * 2),
    )

    # TODO(synk): on v5e with decode/weight-streaming shapes, consider
    # pipeline_mode=pl.Buffered(3) on the packed-weight BlockSpec if the trace
    # shows exposed DMA behind the short per-step compute.
    out = pl.pallas_call(
        _make_awq_kernel(factored),
        out_shape=jax.ShapeDtypeStruct((m, n), x.dtype),
        grid_spec=pltpu.PrefetchScalarGridSpec(
            num_scalar_prefetch=0,
            grid=grid,
            in_specs=[
                pl.BlockSpec((tm, tk), lambda i, j, g: (i, g)),            # x (bf16)
                pl.BlockSpec((gps, sub, tn), lambda i, j, g: (g, 0, j)),   # packed W
                pl.BlockSpec((gps, 1, tn), lambda i, j, g: (g, 0, j)),     # scales f32
                pl.BlockSpec((gps, 1, tn), lambda i, j, g: (g, 0, j)),     # -z*s  f32
                pl.BlockSpec((1, tn), lambda i, j, g: (0, j)),             # bias
            ],
            out_specs=pl.BlockSpec((tm, tn), lambda i, j, g: (i, j)),
            scratch_shapes=[
                pltpu.VMEM((tm, tn), jnp.float32),      # f32 accumulator
                pltpu.VMEM((tk, tn), jnp.bfloat16),     # shared dequant scratch
            ],
        ),
        compiler_params=pltpu.CompilerParams(
            dimension_semantics=("parallel", "parallel", "arbitrary")),
        cost_estimate=cost,
    )(x, packed_k, s3, zs3, bias2d)
    return out


# ---------------------------------------------------------------------------
# Module-like wrapper (synthetic deterministic "weights", no checkpoint load)
# ---------------------------------------------------------------------------
class QuantLinearPallas:
    QUANT_TYPE = "ipex_awq_pallas"

    def __init__(self, w_bit, group_size, in_features, out_features, bias, key):
        assert w_bit == 4, "Only 4 bit are supported for now."
        self.compute_dtype = jnp.bfloat16        # no XPU on TPU -> bfloat16 branch
        self.in_features = in_features
        self.out_features = out_features
        self.w_bit = w_bit
        self.group_size = group_size if group_size != -1 else in_features
        self.pack_num = 32 // w_bit
        assert in_features % self.group_size == 0
        assert out_features % self.pack_num == 0
        n_groups = in_features // self.group_size

        k_w, k_z, k_s, k_b = jax.random.split(key, 4)
        # Deterministic synthetic int4 weights / zeros / scales / bias.
        w_int = jax.random.randint(k_w, (in_features, out_features), 0, 16, jnp.int32)
        z_int = jax.random.randint(k_z, (n_groups, out_features), 0, 16, jnp.int32)
        self.qweight = pack_awq(w_int)                                   # (K, N//8) int32
        self.qzeros = pack_awq(z_int)                                    # (G, N//8) int32
        self.scales = jax.random.uniform(
            k_s, (n_groups, out_features), jnp.float32, 0.001, 0.01
        ).astype(self.compute_dtype)                                     # (G, N) bf16
        self.bias = (jax.random.normal(k_b, (out_features,), jnp.float32)
                     .astype(self.compute_dtype) if bias else None)

        # One-time weight prep (analogue of post_init): K-repacked 4-bit codes +
        # f32 scales + fused zero-point*scale.  No per-forward unpack in HBM.
        self._packed_k, self._s3, self._zs3 = prepare_awq_weights(
            self.qweight, self.qzeros, self.scales, self.group_size)

        # keep unpacked copies only for the pure-JAX reference
        self._w_int, self._z_int = w_int, z_int

    def __call__(self, x, *, mode=None):
        x = x.astype(self.compute_dtype)
        lead_shape = x.shape[:-1]
        x2d = x.reshape(-1, self.in_features)
        y = awq_linear_packed(x2d, self._packed_k, self._s3, self._zs3,
                              self.bias, self.group_size, mode=mode)
        return y.reshape(*lead_shape, self.out_features)

    def reference(self, x):
        g_idx = jnp.arange(self.in_features) // self.group_size
        w_dq = (self._w_int.astype(jnp.float32)
                - self._z_int[g_idx].astype(jnp.float32)) \
               * self.scales[g_idx].astype(jnp.float32)
        y = x.astype(jnp.float32) @ w_dq
        if self.bias is not None:
            y = y + self.bias.astype(jnp.float32)
        return y


if __name__ == "__main__":
    key = jax.random.PRNGKey(0)
    k_x1, k_x2, k_mod = jax.random.split(key, 3)

    in_features, out_features, group_size = 256, 256, 128

    layer = QuantLinearPallas(w_bit=4, group_size=group_size,
                              in_features=in_features, out_features=out_features,
                              bias=True, key=k_mod)

    # Decode-like shape -> factored scale/zero path.
    x_dec = jax.random.normal(k_x1, (16, in_features), jnp.float32).astype(jnp.bfloat16)
    y_dec = jax.block_until_ready(layer(x_dec))
    np.testing.assert_allclose(np.asarray(y_dec, dtype=np.float32),
                               np.asarray(layer.reference(x_dec), dtype=np.float32),
                               rtol=2e-2, atol=2e-2)

    # Prefill-like shape -> shared dequant scratch, single dot per grid step.
    x_pre = jax.random.normal(k_x2, (256, in_features), jnp.float32).astype(jnp.bfloat16)
    y_pre = jax.block_until_ready(layer(x_pre, mode="prefill"))
    np.testing.assert_allclose(np.asarray(y_pre, dtype=np.float32),
                               np.asarray(layer.reference(x_pre), dtype=np.float32),
                               rtol=2e-2, atol=2e-2)

    print("KERNEL_OK")
</pallas_src>

<mosaic_0001>
module attributes {stable_mosaic.version = 11 : i64} {
  func.func @kernel(%arg0: i32, %arg1: i32, %arg2: i32, %arg3: memref<16x256xbf16, #tpu.memory_space<vmem>>, %arg4: memref<2x16x256xi32, #tpu.memory_space<vmem>>, %arg5: memref<2x1x256xf32, #tpu.memory_space<vmem>>, %arg6: memref<2x1x256xf32, #tpu.memory_space<vmem>>, %arg7: memref<1x256xbf16, #tpu.memory_space<vmem>>, %arg8: memref<16x256xbf16, #tpu.memory_space<vmem>>, %arg9: memref<16x256xf32, #tpu.memory_space<vmem>>, %arg10: memref<256x256xbf16, #tpu.memory_space<vmem>>) attributes {dimension_semantics = [#tpu.dimension_semantics<parallel>, #tpu.dimension_semantics<parallel>, #tpu.dimension_semantics<arbitrary>], iteration_bounds = array<i64: 1, 1, 1>, scalar_prefetch = 0 : i64, scratch_operands = 2 : i64, tpu.core_type = #tpu.core_type<tc>, window_params = [{transform_indices = @transform_0, window_bounds = array<i64: 16, 256>}, {transform_indices = @transform_1, window_bounds = array<i64: 2, 16, 256>}, {transform_indices = @transform_2, window_bounds = array<i64: 2, 1, 256>}, {transform_indices = @transform_3, window_bounds = array<i64: 2, 1, 256>}, {transform_indices = @transform_4, window_bounds = array<i64: 1, 256>}, {transform_indices = @transform_5, window_bounds = array<i64: 16, 256>}]} {
    %c0_i32 = arith.constant 0 : i32
    %0 = arith.cmpi eq, %arg2, %c0_i32 : i32
    %1 = arith.extui %0 : i1 to i32
    %c0_i32_0 = arith.constant 0 : i32
    %2 = arith.cmpi ne, %1, %c0_i32_0 : i32
    scf.if %2 {
      %cst_79 = arith.constant 0.000000e+00 : f32
      %160 = vector.broadcast %cst_79 : f32 to vector<16x256xf32>
      %c0_80 = arith.constant 0 : index
      %c0_81 = arith.constant 0 : index
      %161 = vector.load %arg9[%c0_80, %c0_81] : memref<16x256xf32, #tpu.memory_space<vmem>>, vector<16x256xf32>
      tpu.vector_store %arg9[%c0_80, %c0_81], %160 {strides = array<i32>} : memref<16x256xf32, #tpu.memory_space<vmem>>, vector<16x256xf32>,
    } else {
    }
    %c0 = arith.constant 0 : index
    %c0_1 = arith.constant 0 : index
    %c0_2 = arith.constant 0 : index
    %3 = vector.load %arg4[%c0, %c0_1, %c0_2] : memref<2x16x256xi32, #tpu.memory_space<vmem>>, vector<1x16x256xi32>
    %4 = vector.shape_cast %3 : vector<1x16x256xi32> to vector<16x256xi32>
    %c0_i32_3 = arith.constant 0 : i32
    %5 = vector.broadcast %c0_i32_3 : i32 to vector<16x256xi32>
    %6 = arith.shrsi %4, %5 : vector<16x256xi32>
    %c15_i32 = arith.constant 15 : i32
    %7 = vector.broadcast %c15_i32 : i32 to vector<16x256xi32>
    %8 = arith.andi %6, %7 : vector<16x256xi32>
    %9 = arith.sitofp %8 : vector<16x256xi32> to vector<16x256xf32>
    %10 = arith.truncf %9 : vector<16x256xf32> to vector<16x256xbf16>
    %c0_4 = arith.constant 0 : index
    %c0_5 = arith.constant 0 : index
    %11 = vector.load %arg10[%c0_4, %c0_5] : memref<256x256xbf16, #tpu.memory_space<vmem>>, vector<16x256xbf16>
    tpu.vector_store %arg10[%c0_4, %c0_5], %10 {strides = array<i32>} : memref<256x256xbf16, #tpu.memory_space<vmem>>, vector<16x256xbf16>,
    %c4_i32 = arith.constant 4 : i32
    %12 = vector.broadcast %c4_i32 : i32 to vector<16x256xi32>
    %13 = arith.shrsi %4, %12 : vector<16x256xi32>
    %c15_i32_6 = arith.constant 15 : i32
    %14 = vector.broadcast %c15_i32_6 : i32 to vector<16x256xi32>
    %15 = arith.andi %13, %14 : vector<16x256xi32>
    %16 = arith.sitofp %15 : vector<16x256xi32> to vector<16x256xf32>
    %17 = arith.truncf %16 : vector<16x256xf32> to vector<16x256xbf16>
    %c16 = arith.constant 16 : index
    %c0_7 = arith.constant 0 : index
    %18 = vector.load %arg10[%c16, %c0_7] : memref<256x256xbf16, #tpu.memory_space<vmem>>, vector<16x256xbf16>
    tpu.vector_store %arg10[%c16, %c0_7], %17 {strides = array<i32>} : memref<256x256xbf16, #tpu.memory_space<vmem>>, vector<16x256xbf16>,
    %c8_i32 = arith.constant 8 : i32
    %19 = vector.broadcast %c8_i32 : i32 to vector<16x256xi32>
    %20 = arith.shrsi %4, %19 : vector<16x256xi32>
    %c15_i32_8 = arith.constant 15 : i32
    %21 = vector.broadcast %c15_i32_8 : i32 to vector<16x256xi32>
    %22 = arith.andi %20, %21 : vector<16x256xi32>
    %23 = arith.sitofp %22 : vector<16x256xi32> to vector<16x256xf32>
    %24 = arith.truncf %23 : vector<16x256xf32> to vector<16x256xbf16>
    %c32 = arith.constant 32 : index
    %c0_9 = arith.constant 0 : index
    %25 = vector.load %arg10[%c32, %c0_9] : memref<256x256xbf16, #tpu.memory_space<vmem>>, vector<16x256xbf16>
    tpu.vector_store %arg10[%c32, %c0_9], %24 {strides = array<i32>} : memref<256x256xbf16, #tpu.memory_space<vmem>>, vector<16x256xbf16>,
    %c12_i32 = arith.constant 12 : i32
    %26 = vector.broadcast %c12_i32 : i32 to vector<16x256xi32>
    %27 = arith.shrsi %4, %26 : vector<16x256xi32>
    %c15_i32_10 = arith.constant 15 : i32
    %28 = vector.broadcast %c15_i32_10 : i32 to vector<16x256xi32>
    %29 = arith.andi %27, %28 : vector<16x256xi32>
    %30 = arith.sitofp %29 : vector<16x256xi32> to vector<16x256xf32>
    %31 = arith.truncf %30 : vector<16x256xf32> to vector<16x256xbf16>
    %c48 = arith.constant 48 : index
    %c0_11 = arith.constant 0 : index
    %32 = vector.load %arg10[%c48, %c0_11] : memref<256x256xbf16, #tpu.memory_space<vmem>>, vector<16x256xbf16>
    tpu.vector_store %arg10[%c48, %c0_11], %31 {strides = array<i32>} : memref<256x256xbf16, #tpu.memory_space<vmem>>, vector<16x256xbf16>,
    %c16_i32 = arith.constant 16 : i32
    %33 = vector.broadcast %c16_i32 : i32 to vector<16x256xi32>
    %34 = arith.shrsi %4, %33 : vector<16x256xi32>
    %c15_i32_12 = arith.constant 15 : i32
    %35 = vector.broadcast %c15_i32_12 : i32 to vector<16x256xi32>
    %36 = arith.andi %34, %35 : vector<16x256xi32>
    %37 = arith.sitofp %36 : vector<16x256xi32> to vector<16x256xf32>
    %38 = arith.truncf %37 : vector<16x256xf32> to vector<16x256xbf16>
    %c64 = arith.constant 64 : index
    %c0_13 = arith.constant 0 : index
    %39 = vector.load %arg10[%c64, %c0_13] : memref<256x256xbf16, #tpu.memory_space<vmem>>, vector<16x256xbf16>
    tpu.vector_store %arg10[%c64, %c0_13], %38 {strides = array<i32>} : memref<256x256xbf16, #tpu.memory_space<vmem>>, vector<16x256xbf16>,
    %c20_i32 = arith.constant 20 : i32
    %40 = vector.broadcast %c20_i32 : i32 to vector<16x256xi32>
    %41 = arith.shrsi %4, %40 : vector<16x256xi32>
    %c15_i32_14 = arith.constant 15 : i32
    %42 = vector.broadcast %c15_i32_14 : i32 to vector<16x256xi32>
    %43 = arith.andi %41, %42 : vector<16x256xi32>
    %44 = arith.sitofp %43 : vector<16x256xi32> to vector<16x256xf32>
    %45 = arith.truncf %44 : vector<16x256xf32> to vector<16x256xbf16>
    %c80 = arith.constant 80 : index
    %c0_15 = arith.constant 0 : index
    %46 = vector.load %arg10[%c80, %c0_15] : memref<256x256xbf16, #tpu.memory_space<vmem>>, vector<16x256xbf16>
    tpu.vector_store %arg10[%c80, %c0_15], %45 {strides = array<i32>} : memref<256x256xbf16, #tpu.memory_space<vmem>>, vector<16x256xbf16>,
    %c24_i32 = arith.constant 24 : i32
    %47 = vector.broadcast %c24_i32 : i32 to vector<16x256xi32>
    %48 = arith.shrsi %4, %47 : vector<16x256xi32>
    %c15_i32_16 = arith.constant 15 : i32
    %49 = vector.broadcast %c15_i32_16 : i32 to vector<16x256xi32>
    %50 = arith.andi %48, %49 : vector<16x256xi32>
    %51 = arith.sitofp %50 : vector<16x256xi32> to vector<16x256xf32>
    %52 = arith.truncf %51 : vector<16x256xf32> to vector<16x256xbf16>
    %c96 = arith.constant 96 : index
    %c0_17 = arith.constant 0 : index
    %53 = vector.load %arg10[%c96, %c0_17] : memref<256x256xbf16, #tpu.memory_space<vmem>>, vector<16x256xbf16>
    tpu.vector_store %arg10[%c96, %c0_17], %52 {strides = array<i32>} : memref<256x256xbf16, #tpu.memory_space<vmem>>, vector<16x256xbf16>,
    %c28_i32 = arith.constant 28 : i32
    %54 = vector.broadcast %c28_i32 : i32 to vector<16x256xi32>
    %55 = arith.shrsi %4, %54 : vector<16x256xi32>
    %c15_i32_18 = arith.constant 15 : i32
    %56 = vector.broadcast %c15_i32_18 : i32 to vector<16x256xi32>
    %57 = arith.andi %55, %56 : vector<16x256xi32>
    %58 = arith.sitofp %57 : vector<16x256xi32> to vector<16x256xf32>
    %59 = arith.truncf %58 : vector<16x256xf32> to vector<16x256xbf16>
    %c112 = arith.constant 112 : index
    %c0_19 = arith.constant 0 : index
    %60 = vector.load %arg10[%c112, %c0_19] : memref<256x256xbf16, #tpu.memory_space<vmem>>, vector<16x256xbf16>
    tpu.vector_store %arg10[%c112, %c0_19], %59 {strides = array<i32>} : memref<256x256xbf16, #tpu.memory_space<vmem>>, vector<16x256xbf16>,
    %c0_20 = arith.constant 0 : index
    %c0_21 = arith.constant 0 : index
    %61 = vector.load %arg3[%c0_20, %c0_21] : memref<16x256xbf16, #tpu.memory_space<vmem>>, vector<16x128xbf16>
    %c0_22 = arith.constant 0 : index
    %c0_23 = arith.constant 0 : index
    %62 = vector.load %arg10[%c0_22, %c0_23] : memref<256x256xbf16, #tpu.memory_space<vmem>>, vector<128x256xbf16>
    %cst = arith.constant dense<0.000000e+00> : vector<16x256xf32>
    %63 = tpu.matmul %61, %62, %cst {dimension_numbers = #tpu.dot_dimension_numbers<[1], [0], [0], [1], [0, 0, 1, 1], [], []>} : vector<16x128xbf16>, vector<128x256xbf16>, vector<16x256xf32> -> vector<16x256xf32>
    %64 = arith.extf %61 : vector<16x128xbf16> to vector<16x128xf32>
    %cst_24 = arith.constant dense<0.000000e+00> : vector<16xf32>
    %65 = vector.multi_reduction <add>, %64, %cst_24 [1] : vector<16x128xf32> to vector<16xf32>
    %66 = vector.shape_cast %65 : vector<16xf32> to vector<16x1xf32>
    %c0_25 = arith.constant 0 : index
    %c0_26 = arith.constant 0 : index
    %67 = vector.load %arg9[%c0_25, %c0_26] : memref<16x256xf32, #tpu.memory_space<vmem>>, vector<16x256xf32>
    %c0_27 = arith.constant 0 : index
    %c0_28 = arith.constant 0 : index
    %c0_29 = arith.constant 0 : index
    %68 = vector.load %arg5[%c0_27, %c0_28, %c0_29] : memref<2x1x256xf32, #tpu.memory_space<vmem>>, vector<1x1x256xf32>
    %69 = vector.shape_cast %68 : vector<1x1x256xf32> to vector<1x256xf32>
    %70 = vector.broadcast %69 : vector<1x256xf32> to vector<16x256xf32>
    %71 = arith.mulf %63, %70 : vector<16x256xf32>
    %c0_30 = arith.constant 0 : index
    %c0_31 = arith.constant 0 : index
    %c0_32 = arith.constant 0 : index
    %72 = vector.load %arg6[%c0_30, %c0_31, %c0_32] : memref<2x1x256xf32, #tpu.memory_space<vmem>>, vector<1x1x256xf32>
    %73 = vector.shape_cast %72 : vector<1x1x256xf32> to vector<1x256xf32>
    %74 = vector.broadcast %66 : vector<16x1xf32> to vector<16x256xf32>
    %75 = vector.broadcast %73 : vector<1x256xf32> to vector<16x256xf32>
    %76 = arith.mulf %74, %75 : vector<16x256xf32>
    %77 = arith.addf %71, %76 : vector<16x256xf32>
    %78 = arith.addf %67, %77 : vector<16x256xf32>
    %c0_33 = arith.constant 0 : index
    %c0_34 = arith.constant 0 : index
    %79 = vector.load %arg9[%c0_33, %c0_34] : memref<16x256xf32, #tpu.memory_space<vmem>>, vector<16x256xf32>
    tpu.vector_store %arg9[%c0_33, %c0_34], %78 {strides = array<i32>} : memref<16x256xf32, #tpu.memory_space<vmem>>, vector<16x256xf32>,
    %c1 = arith.constant 1 : index
    %c0_35 = arith.constant 0 : index
    %c0_36 = arith.constant 0 : index
    %80 = vector.load %arg4[%c1, %c0_35, %c0_36] : memref<2x16x256xi32, #tpu.memory_space<vmem>>, vector<1x16x256xi32>
    %81 = vector.shape_cast %80 : vector<1x16x256xi32> to vector<16x256xi32>
    %c0_i32_37 = arith.constant 0 : i32
    %82 = vector.broadcast %c0_i32_37 : i32 to vector<16x256xi32>
    %83 = arith.shrsi %81, %82 : vector<16x256xi32>
    %c15_i32_38 = arith.constant 15 : i32
    %84 = vector.broadcast %c15_i32_38 : i32 to vector<16x256xi32>
    %85 = arith.andi %83, %84 : vector<16x256xi32>
    %86 = arith.sitofp %85 : vector<16x256xi32> to vector<16x256xf32>
    %87 = arith.truncf %86 : vector<16x256xf32> to vector<16x256xbf16>
    %c128 = arith.constant 128 : index
    %c0_39 = arith.constant 0 : index
    %88 = vector.load %arg10[%c128, %c0_39] : memref<256x256xbf16, #tpu.memory_space<vmem>>, vector<16x256xbf16>
    tpu.vector_store %arg10[%c128, %c0_39], %87 {strides = array<i32>} : memref<256x256xbf16, #tpu.memory_space<vmem>>, vector<16x256xbf16>,
    %c4_i32_40 = arith.constant 4 : i32
    %89 = vector.broadcast %c4_i32_40 : i32 to vector<16x256xi32>
    %90 = arith.shrsi %81, %89 : vector<16x256xi32>
    %c15_i32_41 = arith.constant 15 : i32
    %91 = vector.broadcast %c15_i32_41 : i32 to vector<16x256xi32>
    %92 = arith.andi %90, %91 : vector<16x256xi32>
    %93 = arith.sitofp %92 : vector<16x256xi32> to vector<16x256xf32>
    %94 = arith.truncf %93 : vector<16x256xf32> to vector<16x256xbf16>
    %c144 = arith.constant 144 : index
    %c0_42 = arith.constant 0 : index
    %95 = vector.load %arg10[%c144, %c0_42] : memref<256x256xbf16, #tpu.memory_space<vmem>>, vector<16x256xbf16>
    tpu.vector_store %arg10[%c144, %c0_42], %94 {strides = array<i32>} : memref<256x256xbf16, #tpu.memory_space<vmem>>, vector<16x256xbf16>,
    %c8_i32_43 = arith.constant 8 : i32
    %96 = vector.broadcast %c8_i32_43 : i32 to vector<16x256xi32>
    %97 = arith.shrsi %81, %96 : vector<16x256xi32>
    %c15_i32_44 = arith.constant 15 : i32
    %98 = vector.broadcast %c15_i32_44 : i32 to vector<16x256xi32>
    %99 = arith.andi %97, %98 : vector<16x256xi32>
    %100 = arith.sitofp %99 : vector<16x256xi32> to vector<16x256xf32>
    %101 = arith.truncf %100 : vector<16x256xf32> to vector<16x256xbf16>
    %c160 = arith.constant 160 : index
    %c0_45 = arith.constant 0 : index
    %102 = vector.load %arg10[%c160, %c0_45] : memref<256x256xbf16, #tpu.memory_space<vmem>>, vector<16x256xbf16>
    tpu.vector_store %arg10[%c160, %c0_45], %101 {strides = array<i32>} : memref<256x256xbf16, #tpu.memory_space<vmem>>, vector<16x256xbf16>,
    %c12_i32_46 = arith.constant 12 : i32
    %103 = vector.broadcast %c12_i32_46 : i32 to vector<16x256xi32>
    %104 = arith.shrsi %81, %103 : vector<16x256xi32>
    %c15_i32_47 = arith.constant 15 : i32
    %105 = vector.broadcast %c15_i32_47 : i32 to vector<16x256xi32>
    %106 = arith.andi %104, %105 : vector<16x256xi32>
    %107 = arith.sitofp %106 : vector<16x256xi32> to vector<16x256xf32>
    %108 = arith.truncf %107 : vector<16x256xf32> to vector<16x256xbf16>
    %c176 = arith.constant 176 : index
    %c0_48 = arith.constant 0 : index
    %109 = vector.load %arg10[%c176, %c0_48] : memref<256x256xbf16, #tpu.memory_space<vmem>>, vector<16x256xbf16>
    tpu.vector_store %arg10[%c176, %c0_48], %108 {strides = array<i32>} : memref<256x256xbf16, #tpu.memory_space<vmem>>, vector<16x256xbf16>,
    %c16_i32_49 = arith.constant 16 : i32
    %110 = vector.broadcast %c16_i32_49 : i32 to vector<16x256xi32>
    %111 = arith.shrsi %81, %110 : vector<16x256xi32>
    %c15_i32_50 = arith.constant 15 : i32
    %112 = vector.broadcast %c15_i32_50 : i32 to vector<16x256xi32>
    %113 = arith.andi %111, %112 : vector<16x256xi32>
    %114 = arith.sitofp %113 : vector<16x256xi32> to vector<16x256xf32>
    %115 = arith.truncf %114 : vector<16x256xf32> to vector<16x256xbf16>
    %c192 = arith.constant 192 : index
    %c0_51 = arith.constant 0 : index
    %116 = vector.load %arg10[%c192, %c0_51] : memref<256x256xbf16, #tpu.memory_space<vmem>>, vector<16x256xbf16>
    tpu.vector_store %arg10[%c192, %c0_51], %115 {strides = array<i32>} : memref<256x256xbf16, #tpu.memory_space<vmem>>, vector<16x256xbf16>,
    %c20_i32_52 = arith.constant 20 : i32
    %117 = vector.broadcast %c20_i32_52 : i32 to vector<16x256xi32>
    %118 = arith.shrsi %81, %117 : vector<16x256xi32>
    %c15_i32_53 = arith.constant 15 : i32
    %119 = vector.broadcast %c15_i32_53 : i32 to vector<16x256xi32>
    %120 = arith.andi %118, %119 : vector<16x256xi32>
    %121 = arith.sitofp %120 : vector<16x256xi32> to vector<16x256xf32>
    %122 = arith.truncf %121 : vector<16x256xf32> to vector<16x256xbf16>
    %c208 = arith.constant 208 : index
    %c0_54 = arith.constant 0 : index
    %123 = vector.load %arg10[%c208, %c0_54] : memref<256x256xbf16, #tpu.memory_space<vmem>>, vector<16x256xbf16>
    tpu.vector_store %arg10[%c208, %c0_54], %122 {strides = array<i32>} : memref<256x256xbf16, #tpu.memory_space<vmem>>, vector<16x256xbf16>,
    %c24_i32_55 = arith.constant 24 : i32
    %124 = vector.broadcast %c24_i32_55 : i32 to vector<16x256xi32>
    %125 = arith.shrsi %81, %124 : vector<16x256xi32>
    %c15_i32_56 = arith.constant 15 : i32
    %126 = vector.broadcast %c15_i32_56 : i32 to vector<16x256xi32>
    %127 = arith.andi %125, %126 : vector<16x256xi32>
    %128 = arith.sitofp %127 : vector<16x256xi32> to vector<16x256xf32>
    %129 = arith.truncf %128 : vector<16x256xf32> to vector<16x256xbf16>
    %c224 = arith.constant 224 : index
    %c0_57 = arith.constant 0 : index
    %130 = vector.load %arg10[%c224, %c0_57] : memref<256x256xbf16, #tpu.memory_space<vmem>>, vector<16x256xbf16>
    tpu.vector_store %arg10[%c224, %c0_57], %129 {strides = array<i32>} : memref<256x256xbf16, #tpu.memory_space<vmem>>, vector<16x256xbf16>,
    %c28_i32_58 = arith.constant 28 : i32
    %131 = vector.broadcast %c28_i32_58 : i32 to vector<16x256xi32>
    %132 = arith.shrsi %81, %131 : vector<16x256xi32>
    %c15_i32_59 = arith.constant 15 : i32
    %133 = vector.broadcast %c15_i32_59 : i32 to vector<16x256xi32>
    %134 = arith.andi %132, %133 : vector<16x256xi32>
    %135 = arith.sitofp %134 : vector<16x256xi32> to vector<16x256xf32>
    %136 = arith.truncf %135 : vector<16x256xf32> to vector<16x256xbf16>
    %c240 = arith.constant 240 : index
    %c0_60 = arith.constant 0 : index
    %137 = vector.load %arg10[%c240, %c0_60] : memref<256x256xbf16, #tpu.memory_space<vmem>>, vector<16x256xbf16>
    tpu.vector_store %arg10[%c240, %c0_60], %136 {strides = array<i32>} : memref<256x256xbf16, #tpu.memory_space<vmem>>, vector<16x256xbf16>,
    %c0_61 = arith.constant 0 : index
    %c128_62 = arith.constant 128 : index
    %138 = vector.load %arg3[%c0_61, %c128_62] : memref<16x256xbf16, #tpu.memory_space<vmem>>, vector<16x128xbf16>
    %c128_63 = arith.constant 128 : index
    %c0_64 = arith.constant 0 : index
    %139 = vector.load %arg10[%c128_63, %c0_64] : memref<256x256xbf16, #tpu.memory_space<vmem>>, vector<128x256xbf16>
    %cst_65 = arith.constant dense<0.000000e+00> : vector<16x256xf32>
    %140 = tpu.matmul %138, %139, %cst_65 {dimension_numbers = #tpu.dot_dimension_numbers<[1], [0], [0], [1], [0, 0, 1, 1], [], []>} : vector<16x128xbf16>, vector<128x256xbf16>, vector<16x256xf32> -> vector<16x256xf32>
    %141 = arith.extf %138 : vector<16x128xbf16> to vector<16x128xf32>
    %cst_66 = arith.constant dense<0.000000e+00> : vector<16xf32>
    %142 = vector.multi_reduction <add>, %141, %cst_66 [1] : vector<16x128xf32> to vector<16xf32>
    %143 = vector.shape_cast %142 : vector<16xf32> to vector<16x1xf32>
    %c0_67 = arith.constant 0 : index
    %c0_68 = arith.constant 0 : index
    %144 = vector.load %arg9[%c0_67, %c0_68] : memref<16x256xf32, #tpu.memory_space<vmem>>, vector<16x256xf32>
    %c1_69 = arith.constant 1 : index
    %c0_70 = arith.constant 0 : index
    %c0_71 = arith.constant 0 : index
    %145 = vector.load %arg5[%c1_69, %c0_70, %c0_71] : memref<2x1x256xf32, #tpu.memory_space<vmem>>, vector<1x1x256xf32>
    %146 = vector.shape_cast %145 : vector<1x1x256xf32> to vector<1x256xf32>
    %147 = vector.broadcast %146 : vector<1x256xf32> to vector<16x256xf32>
    %148 = arith.mulf %140, %147 : vector<16x256xf32>
    %c1_72 = arith.constant 1 : index
    %c0_73 = arith.constant 0 : index
    %c0_74 = arith.constant 0 : index
    %149 = vector.load %arg6[%c1_72, %c0_73, %c0_74] : memref<2x1x256xf32, #tpu.memory_space<vmem>>, vector<1x1x256xf32>
    %150 = vector.shape_cast %149 : vector<1x1x256xf32> to vector<1x256xf32>
    %151 = vector.broadcast %143 : vector<16x1xf32> to vector<16x256xf32>
    %152 = vector.broadcast %150 : vector<1x256xf32> to vector<16x256xf32>
    %153 = arith.mulf %151, %152 : vector<16x256xf32>
    %154 = arith.addf %148, %153 : vector<16x256xf32>
    %155 = arith.addf %144, %154 : vector<16x256xf32>
    %c0_75 = arith.constant 0 : index
    %c0_76 = arith.constant 0 : index
    %156 = vector.load %arg9[%c0_75, %c0_76] : memref<16x256xf32, #tpu.memory_space<vmem>>, vector<16x256xf32>
    tpu.vector_store %arg9[%c0_75, %c0_76], %155 {strides = array<i32>} : memref<16x256xf32, #tpu.memory_space<vmem>>, vector<16x256xf32>,
    %c0_i32_77 = arith.constant 0 : i32
    %157 = arith.cmpi eq, %arg2, %c0_i32_77 : i32
    %158 = arith.extui %157 : i1 to i32
    %c0_i32_78 = arith.constant 0 : i32
    %159 = arith.cmpi ne, %158, %c0_i32_78 : i32
    scf.if %159 {
      %c0_79 = arith.constant 0 : index
      %c0_80 = arith.constant 0 : index
      %160 = vector.load %arg9[%c0_79, %c0_80] : memref<16x256xf32, #tpu.memory_space<vmem>>, vector<16x256xf32>
      %c0_81 = arith.constant 0 : index
      %c0_82 = arith.constant 0 : index
      %161 = vector.load %arg7[%c0_81, %c0_82] : memref<1x256xbf16, #tpu.memory_space<vmem>>, vector<1x256xbf16>
      %162 = arith.extf %161 : vector<1x256xbf16> to vector<1x256xf32>
      %163 = vector.broadcast %162 : vector<1x256xf32> to vector<16x256xf32>
      %164 = arith.addf %160, %163 : vector<16x256xf32>
      %165 = arith.truncf %164 : vector<16x256xf32> to vector<16x256xbf16>
      %c0_83 = arith.constant 0 : index
      %c0_84 = arith.constant 0 : index
      %166 = vector.load %arg8[%c0_83, %c0_84] : memref<16x256xbf16, #tpu.memory_space<vmem>>, vector<16x256xbf16>
      tpu.vector_store %arg8[%c0_83, %c0_84], %165 {strides = array<i32>} : memref<16x256xbf16, #tpu.memory_space<vmem>>, vector<16x256xbf16>,
    } else {
    }
    return
  }
  func.func @transform_0(%arg0: i32, %arg1: i32, %arg2: i32) -> (i32, i32) {
    %c0_i32 = arith.constant 0 : i32
    return %arg0, %arg2 : i32, i32
  }
  func.func @transform_1(%arg0: i32, %arg1: i32, %arg2: i32) -> (i32, i32, i32) {
    %c0_i32 = arith.constant 0 : i32
    %c0_i32_0 = arith.constant 0 : i32
    return %arg2, %c0_i32, %arg1 : i32, i32, i32
  }
  func.func @transform_2(%arg0: i32, %arg1: i32, %arg2: i32) -> (i32, i32, i32) {
    %c0_i32 = arith.constant 0 : i32
    %c0_i32_0 = arith.constant 0 : i32
    return %arg2, %c0_i32, %arg1 : i32, i32, i32
  }
  func.func @transform_3(%arg0: i32, %arg1: i32, %arg2: i32) -> (i32, i32, i32) {
    %c0_i32 = arith.constant 0 : i32
    %c0_i32_0 = arith.constant 0 : i32
    return %arg2, %c0_i32, %arg1 : i32, i32, i32
  }
  func.func @transform_4(%arg0: i32, %arg1: i32, %arg2: i32) -> (i32, i32) {
    %c0_i32 = arith.constant 0 : i32
    %c0_i32_0 = arith.constant 0 : i32
    return %c0_i32, %arg1 : i32, i32
  }
  func.func @transform_5(%arg0: i32, %arg1: i32, %arg2: i32) -> (i32, i32) {
    %c0_i32 = arith.constant 0 : i32
    return %arg0, %arg1 : i32, i32
  }
}

</mosaic_0001>

<bundles_post_ra>
// kernel: tpu_custom_call.1
= control target key start
LH: loop header
LB: loop body
LE: loop exit
PB: predicated region body
PF: predicated region fallthrough
CT: control target
= control target key end

     0   :  { %10 = vsyncpa [#allocation5], 0  ;;  %s1346_s0 = inlined_call_operand.hbm [shape: bf16[16,256], index: 0, kind: input, shape index: {}]   ;;  %s1347_s1 = inlined_call_operand.hbm [shape: s32[2,16,256], index: 1, kind: input, shape index: {}]   ;;  %s1348_s2 = inlined_call_operand.hbm [shape: f32[2,1,256], index: 2, kind: input, shape index: {}]   ;;  %s1349_s3 = inlined_call_operand.vmem [shape: f32[2,1,256], index: 3, kind: input, shape index: {}]   ;;  %s1350_s4 = inlined_call_operand.vmem [shape: bf16[1,256], index: 4, kind: input, shape index: {}]   ;;  %s1351_s5 = inlined_call_operand.hbm [shape: bf16[16,256], index: 5, kind: output, shape index: {}]  }
   0x1   :  { %11 = vsyncpa [#allocation8], 0 }
   0x2   :  { %12 = vsyncpa [#allocation6], 0  ;;  %s1198_s18 = smov [#allocation7]  }
   0x3   :  { %s30_s19 = sshll.u32 %s1198_s18, 4  ;;  %s31_s19 = int_to_ptr.vmem [resolvable:$true] %s30_s19 }
   0x4   :  { %s1120_s20 = scalar_lea.vmem %s31_s19, 1024  ;;  %p1125_p1 = scmp.lt.s32.totalorder %s31_s19, %s31_s19 }
   0x5   :  { %p1121_p0 = scmp.ne.s32.totalorder %s31_s19, %s1120_s20  ;;  %p1126_p2 = scmp.lt.s32.totalorder %s1120_s20, %s1120_s20 }
   0x7   :  { %p1127_p3 = por %p1126_p2, %p1125_p1 }
   0x9   :  { %p1128_p4 = pnand %p1127_p3, %p1121_p0 }
   0xb   :  { %1131 = shalt.err (!%p1128_p4)
}
   0xc   :  { %s1199_s21 = smov 256   ;;  %s1200_s22 = smov 16  }
   0xd   :  { %36 = dma.hbm_to_vmem [thread:$0]  %s1347_s1, 1024, %s31_s19, [#allocation8], %s1199_s21, %s1199_s21, %s1200_s22  }
   0xe   :  { %s1201_s25 = smov [#allocation4]  }
   0xf   :  { %s18_s26 = sshll.u32 %s1201_s25, 4  ;;  %s19_s26 = int_to_ptr.vmem [resolvable:$true] %s18_s26 }
  0x10   :  { %s1140_s27 = scalar_lea.vmem %s19_s26, 256  ;;  %p1145_p6 = scmp.lt.s32.totalorder %s19_s26, %s19_s26 }
  0x11   :  { %p1141_p5 = scmp.ne.s32.totalorder %s19_s26, %s1140_s27  ;;  %p1146_p7 = scmp.lt.s32.totalorder %s1140_s27, %s1140_s27 }
  0x13   :  { %p1147_p8 = por %p1146_p7, %p1145_p6 }
  0x15   :  { %p1148_p9 = pnand %p1147_p8, %p1141_p5 }
  0x17   :  { %1151 = shalt.err (!%p1148_p9)
}
  0x18   :  { %s1202_s28 = smov 128   ;;  %s1203_s29 = smov 8  }
  0x19   :  { %24 = dma.hbm_to_vmem [thread:$0]  %s1346_s0, 256, %s19_s26, [#allocation5], %s1202_s28, %s1202_s28, %s1203_s29  }
  0x1a   :  { %s1204_s1 = smov [#allocation9]  }
  0x1b   :  { %s42_s7 = sshll.u32 %s1204_s1, 4  ;;  %s43_s7 = int_to_ptr.vmem [resolvable:$true] %s42_s7 }
  0x1c   :  { %s1160_s8 = scalar_lea.vmem %s43_s7, 64  ;;  %p1165_p11 = scmp.lt.s32.totalorder %s43_s7, %s43_s7 }
  0x1d   :  { %p1161_p10 = scmp.ne.s32.totalorder %s43_s7, %s1160_s8  ;;  %p1166_p12 = scmp.lt.s32.totalorder %s1160_s8, %s1160_s8 }
  0x1f   :  { %p1167_p13 = por %p1166_p12, %p1165_p11 }
  0x21   :  { %p1168_p0 = pnand %p1167_p13, %p1161_p10 }
  0x23   :  { %1171 = shalt.err (!%p1168_p0)
}
  0x24   :  { %s1205_s9 = smov 32   ;;  %s1206_s10 = smov 2  }
  0x25   :  { %48 = dma.hbm_to_vmem [thread:$0]  %s1348_s2, 64, %s43_s7, [#allocation8], %s1205_s9, %s1205_s9, %s1206_s10  }
  0x26   :  { %1192 = dma.done.wait [#allocation5], 256  }
  0x27   :  { %1193 = vsyncadd [#allocation5], 4294967040 }
  0x28   :  { %1194 = dma.done.wait [#allocation8], 1088  }
  0x29   :  { %1195 = vsyncadd [#allocation8], 4294966208  ;;  %v1207_v0 = vmov 0   ;;  %v1251_v1 = vld [vmem:[#allocation7 + $0x8] sm:$0xff]  ;;  %v1253_v2 = vld [vmem:[#allocation7 + $0x18] sm:$0xff] }
  0x2a   :  { %415 = vmatprep.mubr.bf16.mxu0 %v1207_v0  ;;  %825 = vmatprep.mubr.bf16.mxu1 %v1207_v0  ;;  %v1255_v3 = vld [vmem:[#allocation7 + $0x28] sm:$0xff]  ;;  %v971_v4 = vshrl.u32 %v1251_v1, 28  ;;  %v973_v5 = vshrl.u32 %v1253_v2, 28  ;;  %v1259_v6 = vld [vmem:[#allocation7 + $0x38] sm:$0xff]  ;;  %v1262_v8 = vld [vmem:[#allocation7] sm:$0xff]  ;;  %v228_v15 = vshra.s32 %v1251_v1, 24 }
  0x2b   :  { %v1008_v7 = vshrl.u32 %v1255_v3, 28  ;;  %v1264_v9 = vld [vmem:[#allocation7 + $0x10] sm:$0xff]  ;;  %v1010_v10 = vshrl.u32 %v1259_v6, 28  ;;  %v970_v11 = vshrl.u32 %v1262_v8, 28  ;;  %v1269_v13 = vld [vmem:[#allocation7 + $0x20] sm:$0xff]  ;;  %v230_v26 = vshra.s32 %v1253_v2, 24 }
  0x2c   :  { %v972_v12 = vshrl.u32 %v1264_v9, 28  ;;  %v1271_v14 = vld [vmem:[#allocation7 + $0x30] sm:$0xff]  ;;  %v262_v16 = vcvt.s32.f32 %v971_v4  ;;  %v264_v17 = vcvt.s32.f32 %v973_v5  ;;  %v1007_v19 = vshrl.u32 %v1269_v13, 28 }
  0x2d   :  { %v672_v18 = vcvt.s32.f32 %v1008_v7  ;;  %v674_v20 = vcvt.s32.f32 %v1010_v10  ;;  %v261_v21 = vcvt.s32.f32 %v970_v11  ;;  %v1009_v23 = vshrl.u32 %v1271_v14, 28 }
  0x2e   :  { %v263_v22 = vcvt.s32.f32 %v972_v12  ;;  %v1082_v24 = vpack.c.bf16 %v264_v17, %v262_v16  ;;  %v671_v25 = vcvt.s32.f32 %v1007_v19  ;;  %v232_v27 = vand.u32 15, %v228_v15 }
  0x2f   :  { %v1098_v28 = vpack.c.bf16 %v674_v20, %v672_v18  ;;  %v673_v30 = vcvt.s32.f32 %v1009_v23  ;;  %v638_v31 = vshra.s32 %v1255_v3, 24  ;;  %v234_v32 = vand.u32 15, %v230_v26 }
  0x30   :  { %v1081_v29 = vpack.c.bf16 %v263_v22, %v261_v21  ;;  %383 = vmatprep.subr.bf16.mxu0 %v1082_v24  ;;  %v236_v33 = vcvt.s32.f32 %v232_v27  ;;  %v640_v34 = vshra.s32 %v1259_v6, 24  ;;  %v227_v35 = vshra.s32 %v1262_v8, 24 }
  0x31   :  { %793 = vmatprep.subr.bf16.mxu1 %v1098_v28  ;;  %v1097_v36 = vpack.c.bf16 %v673_v30, %v671_v25  ;;  %v642_v37 = vand.u32 15, %v638_v31  ;;  %v229_v38 = vshra.s32 %v1264_v9, 24  ;;  %v637_v39 = vshra.s32 %v1269_v13, 24 }
  0x32   :  { %384 = vmatpush1.bf16.msra.mxu0 %v1081_v29  ;;  %v238_v40 = vcvt.s32.f32 %v234_v32  ;;  %v644_v41 = vand.u32 15, %v640_v34  ;;  %v231_v42 = vand.u32 15, %v227_v35  ;;  %v639_v43 = vshra.s32 %v1271_v14, 24 }
  0x33   :  { %794 = vmatpush1.bf16.msra.mxu1 %v1097_v36  ;;  %v646_v44 = vcvt.s32.f32 %v642_v37  ;;  %v233_v45 = vand.u32 15, %v229_v38  ;;  %v641_v46 = vand.u32 15, %v637_v39  ;;  %v202_v47 = vshra.s32 %v1251_v1, 20 }
  0x34   :  { %v1080_v48 = vpack.c.bf16 %v238_v40, %v236_v33  ;;  %v648_v49 = vcvt.s32.f32 %v644_v41  ;;  %v235_v50 = vcvt.s32.f32 %v231_v42  ;;  %v643_v51 = vand.u32 15, %v639_v43 }
  0x35   :  { %v237_v52 = vcvt.s32.f32 %v233_v45  ;;  %v645_v53 = vcvt.s32.f32 %v641_v46  ;;  %v204_v54 = vshra.s32 %v1253_v2, 20  ;;  %v206_v55 = vand.u32 15, %v202_v47 }
  0x36   :  { %385 = vmatprep.subr.bf16.mxu0 %v1080_v48  ;;  %v1096_v56 = vpack.c.bf16 %v648_v49, %v646_v44  ;;  %v647_v57 = vcvt.s32.f32 %v643_v51  ;;  %v612_v58 = vshra.s32 %v1255_v3, 20  ;;  %v614_v59 = vshra.s32 %v1259_v6, 20 }
  0x37   :  { %v1079_v60 = vpack.c.bf16 %v237_v52, %v235_v50  ;;  %v208_v61 = vand.u32 15, %v204_v54  ;;  %v210_v62 = vcvt.s32.f32 %v206_v55  ;;  %v201_v63 = vshra.s32 %v1262_v8, 20 }
  0x38   :  { %795 = vmatprep.subr.bf16.mxu1 %v1096_v56  ;;  %v1095_v0 = vpack.c.bf16 %v647_v57, %v645_v53  ;;  %v616_v4 = vand.u32 15, %v612_v58  ;;  %v618_v5 = vand.u32 15, %v614_v59  ;;  %v203_v7 = vshra.s32 %v1264_v9, 20 }
  0x39   :  { %386 = vmatpush1.bf16.msra.mxu0 %v1079_v60  ;;  %v212_v10 = vcvt.s32.f32 %v208_v61  ;;  %v205_v11 = vand.u32 15, %v201_v63  ;;  %v611_v12 = vshra.s32 %v1269_v13, 20  ;;  %v613_v15 = vshra.s32 %v1271_v14, 20 }
  0x3a   :  { %796 = vmatpush1.bf16.msra.mxu1 %v1095_v0  ;;  %v620_v16 = vcvt.s32.f32 %v616_v4  ;;  %v622_v17 = vcvt.s32.f32 %v618_v5  ;;  %v207_v18 = vand.u32 15, %v203_v7  ;;  %v176_v19 = vshra.s32 %v1251_v1, 16 }
  0x3b   :  { %v1078_v20 = vpack.c.bf16 %v212_v10, %v210_v62  ;;  %v209_v21 = vcvt.s32.f32 %v205_v11  ;;  %v615_v22 = vand.u32 15, %v611_v12  ;;  %v617_v23 = vand.u32 15, %v613_v15 }
  0x3c   :  { %v1094_v24 = vpack.c.bf16 %v622_v17, %v620_v16  ;;  %v211_v25 = vcvt.s32.f32 %v207_v18  ;;  %v178_v26 = vshra.s32 %v1253_v2, 16  ;;  %v180_v27 = vand.u32 15, %v176_v19 }
  0x3d   :  { %387 = vmatprep.subr.bf16.mxu0 %v1078_v20  ;;  %v619_v28 = vcvt.s32.f32 %v615_v22  ;;  %v621_v29 = vcvt.s32.f32 %v617_v23  ;;  %v586_v30 = vshra.s32 %v1255_v3, 16  ;;  %v588_v31 = vshra.s32 %v1259_v6, 16 }
  0x3e   :  { %797 = vmatprep.subr.bf16.mxu1 %v1094_v24  ;;  %v1077_v32 = vpack.c.bf16 %v211_v25, %v209_v21  ;;  %v182_v33 = vand.u32 15, %v178_v26  ;;  %v184_v34 = vcvt.s32.f32 %v180_v27  ;;  %v175_v35 = vshra.s32 %v1262_v8, 16 }
  0x3f   :  { %v1093_v36 = vpack.c.bf16 %v621_v29, %v619_v28  ;;  %v590_v37 = vand.u32 15, %v586_v30  ;;  %v592_v38 = vand.u32 15, %v588_v31  ;;  %v177_v39 = vshra.s32 %v1264_v9, 16 }
  0x40   :  { %388 = vmatpush1.bf16.msra.mxu0 %v1077_v32  ;;  %v186_v40 = vcvt.s32.f32 %v182_v33  ;;  %v179_v41 = vand.u32 15, %v175_v35  ;;  %v585_v42 = vshra.s32 %v1269_v13, 16  ;;  %v587_v43 = vshra.s32 %v1271_v14, 16 }
  0x41   :  { %798 = vmatpush1.bf16.msra.mxu1 %v1093_v36  ;;  %v594_v44 = vcvt.s32.f32 %v590_v37  ;;  %v596_v45 = vcvt.s32.f32 %v592_v38  ;;  %v181_v46 = vand.u32 15, %v177_v39  ;;  %v150_v47 = vshra.s32 %v1251_v1, 12 }
  0x42   :  { %v1076_v48 = vpack.c.bf16 %v186_v40, %v184_v34  ;;  %v183_v49 = vcvt.s32.f32 %v179_v41  ;;  %v589_v50 = vand.u32 15, %v585_v42  ;;  %v591_v51 = vand.u32 15, %v587_v43 }
  0x43   :  { %v1092_v52 = vpack.c.bf16 %v596_v45, %v594_v44  ;;  %v185_v53 = vcvt.s32.f32 %v181_v46  ;;  %v152_v54 = vshra.s32 %v1253_v2, 12  ;;  %v154_v55 = vand.u32 15, %v150_v47 }
  0x44   :  { %389 = vmatprep.subr.bf16.mxu0 %v1076_v48  ;;  %v593_v56 = vcvt.s32.f32 %v589_v50  ;;  %v595_v57 = vcvt.s32.f32 %v591_v51  ;;  %v560_v58 = vshra.s32 %v1255_v3, 12  ;;  %v562_v59 = vshra.s32 %v1259_v6, 12 }
  0x45   :  { %799 = vmatprep.subr.bf16.mxu1 %v1092_v52  ;;  %v1075_v60 = vpack.c.bf16 %v185_v53, %v183_v49  ;;  %v156_v61 = vand.u32 15, %v152_v54  ;;  %v158_v62 = vcvt.s32.f32 %v154_v55  ;;  %v149_v63 = vshra.s32 %v1262_v8, 12 }
  0x46   :  { %v1091_v0 = vpack.c.bf16 %v595_v57, %v593_v56  ;;  %v564_v4 = vand.u32 15, %v560_v58  ;;  %v566_v5 = vand.u32 15, %v562_v59  ;;  %v151_v7 = vshra.s32 %v1264_v9, 12 }
  0x47   :  { %390 = vmatpush1.bf16.msra.mxu0 %v1075_v60  ;;  %v160_v10 = vcvt.s32.f32 %v156_v61  ;;  %v153_v11 = vand.u32 15, %v149_v63  ;;  %v559_v12 = vshra.s32 %v1269_v13, 12  ;;  %v561_v15 = vshra.s32 %v1271_v14, 12 }
  0x48   :  { %800 = vmatpush1.bf16.msra.mxu1 %v1091_v0  ;;  %v568_v16 = vcvt.s32.f32 %v564_v4  ;;  %v570_v17 = vcvt.s32.f32 %v566_v5  ;;  %v155_v18 = vand.u32 15, %v151_v7  ;;  %v124_v19 = vshra.s32 %v1251_v1, 8 }
  0x49   :  { %v1074_v20 = vpack.c.bf16 %v160_v10, %v158_v62  ;;  %v157_v21 = vcvt.s32.f32 %v153_v11  ;;  %v563_v22 = vand.u32 15, %v559_v12  ;;  %v565_v23 = vand.u32 15, %v561_v15 }
  0x4a   :  { %v1090_v24 = vpack.c.bf16 %v570_v17, %v568_v16  ;;  %v159_v25 = vcvt.s32.f32 %v155_v18  ;;  %v126_v26 = vshra.s32 %v1253_v2, 8  ;;  %v128_v27 = vand.u32 15, %v124_v19 }
  0x4b   :  { %391 = vmatprep.subr.bf16.mxu0 %v1074_v20  ;;  %v567_v28 = vcvt.s32.f32 %v563_v22  ;;  %v569_v29 = vcvt.s32.f32 %v565_v23  ;;  %v534_v30 = vshra.s32 %v1255_v3, 8  ;;  %v536_v31 = vshra.s32 %v1259_v6, 8 }
  0x4c   :  { %801 = vmatprep.subr.bf16.mxu1 %v1090_v24  ;;  %v1073_v32 = vpack.c.bf16 %v159_v25, %v157_v21  ;;  %v130_v33 = vand.u32 15, %v126_v26  ;;  %v132_v34 = vcvt.s32.f32 %v128_v27  ;;  %v123_v35 = vshra.s32 %v1262_v8, 8 }
  0x4d   :  { %v1089_v36 = vpack.c.bf16 %v569_v29, %v567_v28  ;;  %v538_v37 = vand.u32 15, %v534_v30  ;;  %v540_v38 = vand.u32 15, %v536_v31  ;;  %v125_v39 = vshra.s32 %v1264_v9, 8 }
  0x4e   :  { %392 = vmatpush1.bf16.msra.mxu0 %v1073_v32  ;;  %v134_v40 = vcvt.s32.f32 %v130_v33  ;;  %v127_v41 = vand.u32 15, %v123_v35  ;;  %v533_v42 = vshra.s32 %v1269_v13, 8  ;;  %v535_v43 = vshra.s32 %v1271_v14, 8 }
  0x4f   :  { %802 = vmatpush1.bf16.msra.mxu1 %v1089_v36  ;;  %v542_v44 = vcvt.s32.f32 %v538_v37  ;;  %v544_v45 = vcvt.s32.f32 %v540_v38  ;;  %v129_v46 = vand.u32 15, %v125_v39  ;;  %v98_v47 = vshra.s32 %v1251_v1, 4 }
  0x50   :  { %v1072_v48 = vpack.c.bf16 %v134_v40, %v132_v34  ;;  %v131_v49 = vcvt.s32.f32 %v127_v41  ;;  %v537_v50 = vand.u32 15, %v533_v42  ;;  %v539_v51 = vand.u32 15, %v535_v43  ;;  %v279_v41 = vld [vmem:[#allocation4] sm:$0xf] }
  0x51   :  { %v1088_v52 = vpack.c.bf16 %v544_v45, %v542_v44  ;;  %v133_v53 = vcvt.s32.f32 %v129_v46  ;;  %v100_v54 = vshra.s32 %v1253_v2, 4  ;;  %v102_v55 = vand.u32 15, %v98_v47  ;;  %v689_v44 = vld [vmem:[#allocation4 + $0x4] sm:$0xf]  ;;  %v690_v45 = vld [vmem:[#allocation4 + $0xc] sm:$0xf] }
  0x52   :  { %393 = vmatprep.subr.bf16.mxu0 %v1072_v48  ;;  %v541_v56 = vcvt.s32.f32 %v537_v50  ;;  %v543_v57 = vcvt.s32.f32 %v539_v51  ;;  %v508_v58 = vshra.s32 %v1255_v3, 4  ;;  %v510_v59 = vshra.s32 %v1259_v6, 4 }
  0x53   :  { %803 = vmatprep.subr.bf16.mxu1 %v1088_v52  ;;  %v1071_v60 = vpack.c.bf16 %v133_v53, %v131_v49  ;;  %v104_v61 = vand.u32 15, %v100_v54  ;;  %v106_v62 = vcvt.s32.f32 %v102_v55  ;;  %v97_v63 = vshra.s32 %v1262_v8, 4  ;;  %v452_v54 = vld [vmem:[%s1349_s3] sm:$0x3] }
  0x54   :  { %v1087_v0 = vpack.c.bf16 %v543_v57, %v541_v56  ;;  %v512_v4 = vand.u32 15, %v508_v58  ;;  %v514_v5 = vand.u32 15, %v510_v59  ;;  %v99_v7 = vshra.s32 %v1264_v9, 4  ;;  %v1030_v56 = vld [vmem:[%s1349_s3 + $0x2] sm:$0x3]  ;;  %s1208_s3 = smov [#allocation10]  }
  0x55   :  { %394 = vmatpush1.bf16.msra.mxu0 %v1071_v60  ;;  %v108_v10 = vcvt.s32.f32 %v104_v61  ;;  %v101_v11 = vand.u32 15, %v97_v63  ;;  %v507_v12 = vshra.s32 %v1269_v13, 4  ;;  %v509_v15 = vshra.s32 %v1271_v14, 4  ;;  %v436_v58 = vld [vmem:[#allocation9] sm:$0x3] }
  0x56   :  { %804 = vmatpush1.bf16.msra.mxu1 %v1087_v0  ;;  %v516_v16 = vcvt.s32.f32 %v512_v4  ;;  %v518_v17 = vcvt.s32.f32 %v514_v5  ;;  %v103_v18 = vand.u32 15, %v99_v7  ;;  %v76_v19 = vand.u32 15, %v1251_v1  ;;  %v899_v61 = vld [vmem:[%s1350_s4] sm:$0x3]  ;;  %s943_s4 = sshll.u32 %s1208_s3, 4  ;;  %s944_s4 = int_to_ptr.vmem [resolvable:$true] %s943_s4 }
  0x57   :  { %v1070_v20 = vpack.c.bf16 %v108_v10, %v106_v62  ;;  %v105_v21 = vcvt.s32.f32 %v101_v11  ;;  %v511_v22 = vand.u32 15, %v507_v12  ;;  %v513_v23 = vand.u32 15, %v509_v15  ;;  %v847_v62 = vld [vmem:[#allocation9 + $0x2] sm:$0x3]  ;;  %s1172_s17 = scalar_lea.vmem %s944_s4, 256  ;;  %p1177_p2 = scmp.lt.s32.totalorder %s944_s4, %s944_s4 }
  0x58   :  { %v1086_v24 = vpack.c.bf16 %v518_v17, %v516_v16  ;;  %v107_v25 = vcvt.s32.f32 %v103_v18  ;;  %v78_v26 = vand.u32 15, %v1253_v2  ;;  %v80_v27 = vcvt.s32.f32 %v76_v19  ;;  %p1173_p1 = scmp.ne.s32.totalorder %s944_s4, %s1172_s17  ;;  %p1178_p3 = scmp.lt.s32.totalorder %s1172_s17, %s1172_s17 }
  0x59   :  { %395 = vmatprep.subr.bf16.mxu0 %v1070_v20  ;;  %v515_v28 = vcvt.s32.f32 %v511_v22  ;;  %v517_v29 = vcvt.s32.f32 %v513_v23  ;;  %v486_v30 = vand.u32 15, %v1255_v3  ;;  %v488_v31 = vand.u32 15, %v1259_v6  ;;  %v280_v6 = vld [vmem:[#allocation4 + $0x8] sm:$0xf] }
  0x5a   :  { %805 = vmatprep.subr.bf16.mxu1 %v1086_v24  ;;  %v1069_v32 = vpack.c.bf16 %v107_v25, %v105_v21  ;;  %v82_v33 = vcvt.s32.f32 %v78_v26  ;;  %v75_v1 = vand.u32 15, %v1262_v8  ;;  %v77_v34 = vand.u32 15, %v1264_v9  ;;  %p1179_p4 = por %p1178_p3, %p1177_p2 }
  0x5b   :  { %v1085_v35 = vpack.c.bf16 %v517_v29, %v515_v28  ;;  %v490_v36 = vcvt.s32.f32 %v486_v30  ;;  %v492_v37 = vcvt.s32.f32 %v488_v31  ;;  %v485_v2 = vand.u32 15, %v1269_v13 }
  0x5c   :  { %396 = vmatpush1.bf16.msra.mxu0 %v1069_v32  ;;  %v1068_v38 = vpack.c.bf16 %v82_v33, %v80_v27  ;;  %v79_v39 = vcvt.s32.f32 %v75_v1  ;;  %v81_v40 = vcvt.s32.f32 %v77_v34  ;;  %v487_v3 = vand.u32 15, %v1271_v14  ;;  %p1180_p5 = pnand %p1179_p4, %p1173_p1 }
  0x5d   :  { %806 = vmatpush1.bf16.msra.mxu1 %v1085_v35  ;;  %v1084_v42 = vpack.c.bf16 %v492_v37, %v490_v36  ;;  %v489_v43 = vcvt.s32.f32 %v485_v2  ;;  %v836_v46 = vunpack.c.l.bf16 %v689_v44  ;;  %v426_v47 = vunpack.c.l.bf16 %v279_v41 }
  0x5e   :  { %397 = vmatprep.subr.bf16.mxu0 %v1068_v38  ;;  %v1067_v8 = vpack.c.bf16 %v81_v40, %v79_v39  ;;  %v491_v9 = vcvt.s32.f32 %v487_v3  ;;  %v976_v13 = vcombine.low %v279_v41, %v280_v6  ;;  %v837_v49 = vunpack.c.l.bf16 %v690_v45 }
  0x5f   :  { %807 = vmatprep.subr.bf16.mxu1 %v1084_v42  ;;  %838 = vadd.xlane.f32.xlu1 %v836_v46  ;;  %v1013_v50 = vcombine.low %v689_v44, %v690_v45  ;;  %v427_v14 = vunpack.c.l.bf16 %v280_v6  ;;  %v438_v51 = vlaneseq  ;;  %v900_v7 = vunpack.c.l.bf16 %v899_v61 }
  0x60   :  { %398 = vmatpush1.bf16.msra.mxu0 %v1067_v8  ;;  %v1083_v48 = vpack.c.bf16 %v491_v9, %v489_v43  ;;  %428 = vadd.xlane.f32.xlu0 %v426_v47 }
  0x61   :  { %v439_v52 = vshrl.u32 %v438_v51, 7 }
  0x62   :  { %808 = vmatpush1.bf16.msra.mxu1 %v1083_v48 }
  0x63   :  { %416 = vmatmul.mubr.bf16.vlgmr.msra.gmra.mxu0 %v976_v13  ;;  %840 = vadd.xlane.f32.xlu1 %v837_v49  ;;  %v440_v53 = vsub.s32 0, %v439_v52  ;;  %v444_v55 = vsub.s32 1, %v439_v52  ;;  %v908_v10 = vsub.s32 2, %v439_v52 }
  0x64   :  { %430 = vadd.xlane.f32.xlu0 %v427_v14 }
  0x65   :  { %826 = vmatmul.mubr.bf16.vlgmr.msra.gmra.mxu1 %v1013_v50  ;;  %v457_v60 = vrot.slane %v452_v54, %v440_v53  ;;  %v869_v63 = vrot.slane %v1030_v56, %v440_v53  ;;  %v461_v0 = vrot.slane %v452_v54, %v444_v55  ;;  %v441_v4 = vrot.slane %v436_v58, %v440_v53 }
  0x66   :  { %v873_v5 = vrot.slane %v1030_v56, %v444_v55  ;;  %v852_v11 = vrot.slane %v847_v62, %v440_v53  ;;  %v445_v15 = vrot.slane %v436_v58, %v444_v55  ;;  %v856_v21 = vrot.slane %v847_v62, %v444_v55 }
  0x67   :  { %v905_v25 = vrot.slane %v900_v7, %v440_v53  ;;  %v909_v27 = vrot.slane %v900_v7, %v908_v10 }
  0x69   :  { %v915_v2 = vrot.slane %v905_v25, %v440_v53  ;;  %v919_v38 = vrot.slane %v909_v27, %v440_v53 }
  0xe8   :  { %v839_v59 = vpop.xlane.xlu1 %838 }
  0xe9   :  { %v429_v57 = vpop.xlane.xlu0 %428  ;;  %v876_v18 = vmul.f32 %v869_v63, %v839_v59  ;;  %v877_v23 = vmul.f32 %v873_v5, %v839_v59 }
  0xea   :  { %v464_v12 = vmul.f32 %v457_v60, %v429_v57  ;;  %v465_v19 = vmul.f32 %v461_v0, %v429_v57 }
  0xec   :  { %v841_v22 = vpop.xlane.xlu1 %840 }
  0xed   :  { %v431_v17 = vpop.xlane.xlu0 %430  ;;  %v878_v33 = vmul.f32 %v869_v63, %v841_v22  ;;  %v879_v39 = vmul.f32 %v873_v5, %v841_v22 }
  0xee   :  { %v466_v31 = vmul.f32 %v457_v60, %v431_v17  ;;  %v467_v3 = vmul.f32 %v461_v0, %v431_v17 }
 0x123   :  { %v417_v16 = vpop.f32.mrf.mxu0 }
 0x124   :  { %v448_v20 = vmul.f32 %v441_v4, %v417_v16 }
 0x125   :  { %v827_v24 = vpop.f32.mrf.mxu1  ;;  %v419_v26 = vpop.f32.mrf.mxu0 }
 0x126   :  { %v859_v28 = vmul.f32 %v852_v11, %v827_v24  ;;  %v468_v29 = vadd.f32 %v464_v12, %v448_v20  ;;  %v449_v30 = vmul.f32 %v445_v15, %v419_v26 }
 0x127   :  { %v829_v32 = vpop.f32.mrf.mxu1  ;;  %v421_v1 = vpop.f32.mrf.mxu0 }
 0x128   :  { %v880_v34 = vadd.f32 %v876_v18, %v859_v28  ;;  %v469_v35 = vadd.f32 %v465_v19, %v449_v30  ;;  %v860_v36 = vmul.f32 %v856_v21, %v829_v32  ;;  %v450_v37 = vmul.f32 %v441_v4, %v421_v1 }
 0x129   :  { %v831_v40 = vpop.f32.mrf.mxu1  ;;  %v423_v41 = vpop.f32.mrf.mxu0 }
 0x12a   :  { %v884_v6 = vadd.f32 %v880_v34, %v468_v29  ;;  %v881_v42 = vadd.f32 %v877_v23, %v860_v36  ;;  %v861_v43 = vmul.f32 %v852_v11, %v831_v40  ;;  %v470_v44 = vadd.f32 %v466_v31, %v450_v37 }
 0x12b   :  { %v451_v8 = vmul.f32 %v445_v15, %v423_v41  ;;  %v833_v9 = vpop.f32.mrf.mxu1 }
 0x12c   :  { %v885_v45 = vadd.f32 %v881_v42, %v469_v35  ;;  %v882_v46 = vadd.f32 %v878_v33, %v861_v43  ;;  %v862_v47 = vmul.f32 %v856_v21, %v833_v9  ;;  %v920_v48 = vadd.f32 %v915_v2, %v884_v6 }
 0x12d   :  { %v471_v13 = vadd.f32 %v467_v3, %v451_v8 }
 0x12e   :  { %v921_v49 = vadd.f32 %v919_v38, %v885_v45  ;;  %v886_v50 = vadd.f32 %v882_v46, %v470_v44  ;;  %v883_v14 = vadd.f32 %v879_v39, %v862_v47 }
 0x130   :  { %v887_v51 = vadd.f32 %v883_v14, %v471_v13  ;;  %v1065_v52 = vpack.c.bf16 %v921_v49, %v920_v48  ;;  %v922_v53 = vadd.f32 %v915_v2, %v886_v50 }
 0x132   :  { %v923_v54 = vadd.f32 %v919_v38, %v887_v51  ;;  %936 = vst [vmem:[#allocation10] sm:$0xff] %v1065_v52 }
 0x134   :  { %v1066_v55 = vpack.c.bf16 %v923_v54, %v922_v53 }
 0x136   :  { %937 = vst [vmem:[#allocation10 + $0x8] sm:$0xff] %v1066_v55 }
 0x137   :  { %1183 = shalt.err (!%p1180_p5)
}
 0x138   :  { %949 = dma.vmem_to_hbm [thread:$0]  %s944_s4, 256, %s1351_s5, [#allocation6], %s1202_s28, %s1202_s28, %s1203_s29  }
 0x139   :  { %1196 = dma.done.wait [#allocation6], 256  }
 0x13a   :  { %1197 = vsyncadd [#allocation6], 4294967040 }
 0x13b   :  { %953 = vsyncpa [#allocation5], 1 }
 0x13c   :  { %954 = vsyncpa [#allocation8], 1 }
 0x13d   :  { %955 = vsyncpa [#allocation6], 1 }

</bundles_post_ra>
